<compile_context>
chip_gen: v7x
topology: tpu7x:2x2x1
jax: 0.10.0
libtpu: 0.0.40
codegen_flags: <defaults>
</compile_context>

<pallas_src>
import functools

import jax
import jax.numpy as jnp
import numpy as np
from jax.experimental import pallas as pl
from jax.experimental.pallas import tpu as pltpu

TILE_DST = 256    # dst-node tile (sublanes of the output block)
TILE_SRC = 128    # src-node chunk (lanes of the adjacency block; masked-max unroll length)
TILE_POOL = 256   # node tile for the fc_pool precompute pass
_PAD = 256        # lcm of the tiles above


def _agg_dtype():
    """bf16 masked max on v6e/v7x (packed bf16 VALU); f32 on v5e (no bf16 VALU)."""
    try:
        kind = jax.devices()[0].device_kind.lower()
    except Exception:
        return jnp.bfloat16
    if "v5 lite" in kind or "v5e" in kind:
        return jnp.float32
    return jnp.bfloat16


AGG_DTYPE = _agg_dtype()


# ---------------------------------------------------------------------------
# Pass 1: pooled = relu(feat @ W_pool + b_pool), computed once per layer,
# stored bf16 (hoisted out of the dst-tile loop).
# ---------------------------------------------------------------------------
def pool_kernel(feat_ref, wpool_ref, bpool_ref, out_ref):
    x = feat_ref[...].astype(jnp.bfloat16)
    p = jnp.dot(x, wpool_ref[...], preferred_element_type=jnp.float32) + bpool_ref[...]
    out_ref[...] = jnp.maximum(p, 0.0).astype(jnp.bfloat16)


def pool_pass(feat, p):
    n, cin = feat.shape
    assert n % TILE_POOL == 0
    return pl.pallas_call(
        pool_kernel,
        out_shape=jax.ShapeDtypeStruct((n, cin), jnp.bfloat16),
        grid=(n // TILE_POOL,),
        in_specs=[
            pl.BlockSpec((TILE_POOL, cin), lambda i: (i, 0)),
            pl.BlockSpec((cin, cin), lambda i: (0, 0)),
            pl.BlockSpec((1, cin), lambda i: (0, 0)),
        ],
        out_specs=pl.BlockSpec((TILE_POOL, cin), lambda i: (i, 0)),
        compiler_params=pltpu.CompilerParams(dimension_semantics=("parallel",)),
    )(feat, p["w_pool"].astype(jnp.bfloat16), p["b_pool"])


# ---------------------------------------------------------------------------
# Pass 2: neighbor masked-max aggregation + self/neigh/residual combine.
# grid = (dst tiles ["parallel"], src chunks ["arbitrary"]).
# ---------------------------------------------------------------------------
def sage_agg_kernel(feat_dst_ref, pooled_ref, adj_ref,
                    wneigh_ref, wfused_ref, bfused_ref,
                    out_ref, neigh_ref, *, hid, has_res_matmul, tile_src):
    j = pl.program_id(1)

    # ---- masked max over this src chunk: register-resident running max ----
    # Requires adj strictly in {0,1} and pooled >= 0 (post-ReLU): a 0-initialized
    # accumulator then matches the masked max exactly and gives 0 for zero-in-degree
    # rows (DGL semantics).
    pooled = pooled_ref[...].astype(AGG_DTYPE)       # (TILE_SRC, C)
    adj = adj_ref[...]                               # (TILE_DST, TILE_SRC) bf16 {0,1}
    acc = jnp.zeros((adj.shape[0], pooled.shape[1]), AGG_DTYPE)
    # Static unroll over src columns: every temp is one (TILE_DST, C) slab and is
    # consumed immediately by the running max (the serial acc dependence bounds live
    # ranges) — no 3D broadcast temp, no spills, no cross-sublane reduce tree.
    for k in range(tile_src):
        m = adj[:, k:k + 1] != 0                     # (TILE_DST, 1) mask column
        row = pooled[k:k + 1, :]                     # (1, C) src row, sublane-broadcast
        acc = jnp.maximum(acc, jnp.where(m, row, 0.0))

    # One scratch read-modify-write per grid step (v5e has a single vst slot).
    @pl.when(j == 0)
    def _init():
        neigh_ref[...] = acc

    @pl.when(j != 0)
    def _accum():
        neigh_ref[...] = jnp.maximum(neigh_ref[...], acc)

    # ---- combine on the last src chunk of this dst tile ----
    @pl.when(j == pl.num_programs(1) - 1)
    def _finalize():
        feat_dst = feat_dst_ref[...]                 # (TILE_DST, Cin) f32
        # One wide lane-dense MXU pass: feat @ [W_self | W_res] (+ fused biases).
        fused = (jnp.dot(feat_dst.astype(jnp.bfloat16), wfused_ref[...],
                         preferred_element_type=jnp.float32) + bfused_ref[...])
        if has_res_matmul:                           # layer 0: Linear residual fused in
            self_part, res = fused[:, :hid], fused[:, hid:]
        else:                                        # Identity residual: no matmul
            self_part, res = fused, feat_dst
        rst = self_part + jnp.dot(neigh_ref[...].astype(jnp.bfloat16), wneigh_ref[...],
                                  preferred_element_type=jnp.float32)
        out_ref[...] = jnp.maximum(rst, 0.0) + res


def sage_layer(feat, pooled, adj, p, *, first_layer):
    n, cin = feat.shape
    hid = p["w_neigh"].shape[1]
    assert n % TILE_DST == 0 and n % TILE_SRC == 0 and adj.shape == (n, n)
    if not first_layer:
        assert cin == hid, "Identity residual requires cin == hid"

    if first_layer:
        w_fused = jnp.concatenate([p["w_self"], p["w_res"]], axis=1).astype(jnp.bfloat16)
        b_fused = jnp.concatenate([p["bias"], p["b_res"]], axis=1)
    else:
        w_fused = p["w_self"].astype(jnp.bfloat16)
        b_fused = p["bias"]
    w_neigh = p["w_neigh"].astype(jnp.bfloat16)
    wf_out = w_fused.shape[1]

    kernel = functools.partial(sage_agg_kernel, hid=hid,
                               has_res_matmul=first_layer, tile_src=TILE_SRC)

    return pl.pallas_call(
        kernel,
        out_shape=jax.ShapeDtypeStruct((n, hid), jnp.float32),
        grid=(n // TILE_DST, n // TILE_SRC),
        in_specs=[
            pl.BlockSpec((TILE_DST, cin), lambda i, j: (i, 0)),       # feat (dst rows)
            pl.BlockSpec((TILE_SRC, cin), lambda i, j: (j, 0)),       # pooled src chunk (bf16)
            pl.BlockSpec((TILE_DST, TILE_SRC), lambda i, j: (i, j)),  # adjacency mask (bf16)
            pl.BlockSpec((cin, hid), lambda i, j: (0, 0)),            # W_neigh (bf16, resident)
            pl.BlockSpec((cin, wf_out), lambda i, j: (0, 0)),         # [W_self | W_res] (bf16)
            pl.BlockSpec((1, wf_out), lambda i, j: (0, 0)),           # [bias | b_res]
        ],
        out_specs=pl.BlockSpec((TILE_DST, hid), lambda i, j: (i, 0)),
        scratch_shapes=[pltpu.VMEM((TILE_DST, cin), AGG_DTYPE)],      # running neighbor max
        compiler_params=pltpu.CompilerParams(
            dimension_semantics=("parallel", "arbitrary")),
    )(feat, pooled, adj, w_neigh, w_fused, b_fused)


def _round_up(x, m):
    return ((x + m - 1) // m) * m


def sage_forward(features, adj, layer_params):
    n = features.shape[0]
    n_pad = _round_up(n, _PAD)
    # Pad node dim once; padded src rows never contribute (their adj column is 0),
    # padded dst rows are sliced off at the end.
    feat = jnp.pad(features, ((0, n_pad - n), (0, 0)))
    adj_p = jnp.pad(adj, ((0, n_pad - n), (0, n_pad - n))).astype(jnp.bfloat16)
    x = feat
    for i, p in enumerate(layer_params):
        pooled = pool_pass(x, p)
        x = sage_layer(x, pooled, adj_p, p, first_layer=(i == 0))
    return x[:n]


def sage_layer_ref(feat, adj, p, *, first_layer):
    """Pure-JAX reference for one layer (mirrors DGL SAGEConv 'pool', bf16 MXU inputs)."""
    bf, f32 = jnp.bfloat16, jnp.float32
    pooled = jnp.maximum(
        jnp.dot(feat.astype(bf), p["w_pool"].astype(bf), preferred_element_type=f32)
        + p["b_pool"], 0.0)
    masked = jnp.where(adj[:, :, None] > 0.0, pooled[None, :, :], -1e30)
    neigh = jnp.max(masked, axis=1)
    indeg = jnp.sum(adj, axis=1, keepdims=True)
    neigh = jnp.where(indeg > 0.0, neigh, 0.0)
    rst = (jnp.dot(feat.astype(bf), p["w_self"].astype(bf), preferred_element_type=f32)
           + jnp.dot(neigh.astype(bf), p["w_neigh"].astype(bf), preferred_element_type=f32)
           + p["bias"])
    if first_layer:
        res = jnp.dot(feat.astype(bf), p["w_res"].astype(bf),
                      preferred_element_type=f32) + p["b_res"]
    else:
        res = feat
    return jnp.maximum(rst, 0.0) + res


def init_params(key, in_c, hid_c, n_layers):
    params = []
    for i in range(n_layers):
        cin = in_c if i == 0 else hid_c
        keys = jax.random.split(jax.random.fold_in(key, i), 6)
        p = {
            "w_pool": 0.1 * jax.random.normal(keys[0], (cin, cin), jnp.float32),
            "b_pool": 0.1 * jax.random.normal(keys[1], (1, cin), jnp.float32),
            "w_neigh": 0.1 * jax.random.normal(keys[2], (cin, hid_c), jnp.float32),
            "w_self": 0.1 * jax.random.normal(keys[3], (cin, hid_c), jnp.float32),
            "bias": 0.1 * jax.random.normal(keys[4], (1, hid_c), jnp.float32),
        }
        if i == 0:  # nn.Linear residual only on the first layer; Identity afterwards
            p["w_res"] = 0.1 * jax.random.normal(keys[5], (cin, hid_c), jnp.float32)
            p["b_res"] = 0.1 * jax.random.normal(
                jax.random.fold_in(keys[5], 1), (1, hid_c), jnp.float32)
        params.append(p)
    return params


if __name__ == "__main__":
    # Small deterministic problem: 200 nodes (exercises padding to 256), 128-wide channels
    # (lane-dense), 2 SAGE layers.
    N, IN_C, HID_C, N_LAYERS = 200, 128, 128, 2
    key = jax.random.PRNGKey(0)

    # Deterministic edge list (ring + a few extra edges); node 3 gets no in-edge,
    # exercising the zero-in-degree path.
    src_id = [i for i in range(N) if (i + 1) % N != 3] + [0, 0, 5, 9, 17, 100]
    dst_id = [(i + 1) % N for i in range(N) if (i + 1) % N != 3] + [8, 4, 10, 1, 150, 60]
    adj = np.zeros((N, N), dtype=np.float32)
    for s, d in zip(src_id, dst_id):
        adj[d, s] = 1.0                        # adj[dst, src] = 1 (strictly {0,1})
    adj = jnp.asarray(adj)

    k_feat, k_param = jax.random.split(key)
    features = jax.random.normal(k_feat, (N, IN_C), jnp.float32)
    layer_params = init_params(k_param, IN_C, HID_C, N_LAYERS)

    out = jax.block_until_ready(sage_forward(features, adj, layer_params))

    # Sanity check against pure-JAX reference.
    ref = features
    for i, p in enumerate(layer_params):
        ref = sage_layer_ref(ref, adj, p, first_layer=(i == 0))
    np.testing.assert_allclose(np.asarray(out), np.asarray(ref), rtol=1e-3, atol=1e-3)
    assert out.shape == (N, HID_C)

    print("KERNEL_OK")
</pallas_src>

<mosaic_0001>
module attributes {stable_mosaic.version = 11 : i64} {
  func.func @pool_kernel(%arg0: i32, %arg1: memref<256x128xf32, #tpu.memory_space<vmem>>, %arg2: memref<128x128xbf16, #tpu.memory_space<vmem>>, %arg3: memref<1x128xf32, #tpu.memory_space<vmem>>, %arg4: memref<256x128xbf16, #tpu.memory_space<vmem>>) attributes {dimension_semantics = [#tpu.dimension_semantics<parallel>], iteration_bounds = array<i64: 1>, scalar_prefetch = 0 : i64, scratch_operands = 0 : i64, tpu.core_type = #tpu.core_type<tc>, window_params = [{transform_indices = @transform_0, window_bounds = array<i64: 256, 128>}, {pipeline_mode = #tpu.pipeline_mode<synchronous>, transform_indices = @transform_1, window_bounds = array<i64: 128, 128>}, {pipeline_mode = #tpu.pipeline_mode<synchronous>, transform_indices = @transform_2, window_bounds = array<i64: 1, 128>}, {transform_indices = @transform_3, window_bounds = array<i64: 256, 128>}]} {
    %c0 = arith.constant 0 : index
    %c0_0 = arith.constant 0 : index
    %0 = vector.load %arg1[%c0, %c0_0] : memref<256x128xf32, #tpu.memory_space<vmem>>, vector<256x128xf32>
    %1 = arith.truncf %0 : vector<256x128xf32> to vector<256x128xbf16>
    %c0_1 = arith.constant 0 : index
    %c0_2 = arith.constant 0 : index
    %2 = vector.load %arg2[%c0_1, %c0_2] : memref<128x128xbf16, #tpu.memory_space<vmem>>, vector<128x128xbf16>
    %cst = arith.constant dense<0.000000e+00> : vector<256x128xf32>
    %3 = tpu.matmul %1, %2, %cst {dimension_numbers = #tpu.dot_dimension_numbers<[1], [0], [0], [1], [0, 0, 1, 1], [], []>} : vector<256x128xbf16>, vector<128x128xbf16>, vector<256x128xf32> -> vector<256x128xf32>
    %c0_3 = arith.constant 0 : index
    %c0_4 = arith.constant 0 : index
    %4 = vector.load %arg3[%c0_3, %c0_4] : memref<1x128xf32, #tpu.memory_space<vmem>>, vector<1x128xf32>
    %5 = vector.broadcast %4 : vector<1x128xf32> to vector<256x128xf32>
    %6 = arith.addf %3, %5 : vector<256x128xf32>
    %cst_5 = arith.constant 0.000000e+00 : f32
    %7 = vector.broadcast %cst_5 : f32 to vector<256x128xf32>
    %8 = arith.maximumf %6, %7 : vector<256x128xf32>
    %9 = arith.truncf %8 : vector<256x128xf32> to vector<256x128xbf16>
    %c0_6 = arith.constant 0 : index
    %c0_7 = arith.constant 0 : index
    %10 = vector.load %arg4[%c0_6, %c0_7] : memref<256x128xbf16, #tpu.memory_space<vmem>>, vector<256x128xbf16>
    tpu.vector_store %arg4[%c0_6, %c0_7], %9 {strides = array<i32>} : memref<256x128xbf16, #tpu.memory_space<vmem>>, vector<256x128xbf16>,
    return
  }
  func.func @transform_0(%arg0: i32) -> (i32, i32) {
    %c0_i32 = arith.constant 0 : i32
    %c0_i32_0 = arith.constant 0 : i32
    return %arg0, %c0_i32 : i32, i32
  }
  func.func @transform_1(%arg0: i32) -> (i32, i32) {
    %c0_i32 = arith.constant 0 : i32
    %c0_i32_0 = arith.constant 0 : i32
    %c0_i32_1 = arith.constant 0 : i32
    return %c0_i32, %c0_i32_0 : i32, i32
  }
  func.func @transform_2(%arg0: i32) -> (i32, i32) {
    %c0_i32 = arith.constant 0 : i32
    %c0_i32_0 = arith.constant 0 : i32
    %c0_i32_1 = arith.constant 0 : i32
    return %c0_i32, %c0_i32_0 : i32, i32
  }
  func.func @transform_3(%arg0: i32) -> (i32, i32) {
    %c0_i32 = arith.constant 0 : i32
    %c0_i32_0 = arith.constant 0 : i32
    return %arg0, %c0_i32 : i32, i32
  }
}

</mosaic_0001>

<bundles_post_ra>
// kernel: tpu_custom_call.1
= control target key start
LH: loop header
LB: loop body
LE: loop exit
PB: predicated region body
PF: predicated region fallthrough
CT: control target
= control target key end

     0   :  { %8 = vsyncpa [#allocation3], 0  ;;  %s983_s0 = inlined_call_operand.hbm [shape: f32[256,128], index: 0, kind: input, shape index: {}]   ;;  %s984_s1 = inlined_call_operand.hbm [shape: bf16[128,128], index: 1, kind: input, shape index: {}]   ;;  %s985_s2 = inlined_call_operand.vmem [shape: f32[1,128], index: 2, kind: input, shape index: {}]   ;;  %s986_s3 = inlined_call_operand.hbm [shape: bf16[256,128], index: 3, kind: output, shape index: {}]  }
   0x1   :  { %9 = vsyncpa [#allocation6], 0 }
   0x2   :  { %10 = vsyncpa [#allocation4], 0  ;;  %s877_s12 = smov [#allocation2]   ;;  %s805_s16 = scalar_lea.hbm %s983_s0, 4096 }
   0x3   :  { %s16_s13 = sshll.u32 %s877_s12, 4  ;;  %p806_p0 = scmp.ne.s32.totalorder %s983_s0, %s805_s16  ;;  %s17_s13 = int_to_ptr.vmem [resolvable:$true] %s16_s13 }
   0x4   :  { %p809_p1 = scmp.lt.u32.totalorder %s805_s16, %s983_s0 }
   0x6   :  { %p811_p2 = pnand %p809_p1, %p806_p0 }
   0x8   :  { %814 = shalt.err (!%p811_p2)
}
   0x9   :  { %s815_s21 = scalar_lea.vmem %s17_s13, 4096  ;;  %p820_p4 = scmp.lt.s32.totalorder %s17_s13, %s17_s13 }
   0xa   :  { %p816_p3 = scmp.ne.s32.totalorder %s17_s13, %s815_s21  ;;  %p821_p5 = scmp.lt.s32.totalorder %s815_s21, %s815_s21 }
   0xc   :  { %p822_p6 = por %p821_p5, %p820_p4 }
   0xe   :  { %p823_p7 = pnand %p822_p6, %p816_p3 }
  0x10   :  { %826 = shalt.err (!%p823_p7)
}
  0x11   :  { %s878_s22 = smov 128   ;;  %s879_s23 = smov 8  }
  0x12   :  { %22 = dma.hbm_to_vmem [thread:$0]  %s983_s0, 4096, %s17_s13, [#allocation3], %s878_s22, %s878_s22, %s879_s23  }
  0x13   :  { %s880_s26 = smov [#allocation5]   ;;  %s827_s30 = scalar_lea.hbm %s984_s1, 1024 }
  0x14   :  { %s28_s27 = sshll.u32 %s880_s26, 4  ;;  %p828_p8 = scmp.ne.s32.totalorder %s984_s1, %s827_s30  ;;  %s29_s27 = int_to_ptr.vmem [resolvable:$true] %s28_s27 }
  0x15   :  { %p831_p9 = scmp.lt.u32.totalorder %s827_s30, %s984_s1 }
  0x17   :  { %p833_p10 = pnand %p831_p9, %p828_p8 }
  0x19   :  { %836 = shalt.err (!%p833_p10)
}
  0x1a   :  { %s837_s8 = scalar_lea.vmem %s29_s27, 1024  ;;  %p842_p12 = scmp.lt.s32.totalorder %s29_s27, %s29_s27 }
  0x1b   :  { %p838_p11 = scmp.ne.s32.totalorder %s29_s27, %s837_s8  ;;  %p843_p13 = scmp.lt.s32.totalorder %s837_s8, %s837_s8 }
  0x1d   :  { %p844_p0 = por %p843_p13, %p842_p12 }
  0x1f   :  { %p845_p1 = pnand %p844_p0, %p838_p11 }
  0x21   :  { %848 = shalt.err (!%p845_p1)
}
  0x22   :  { %s881_s0 = smov 64   ;;  %s882_s9 = smov 4  }
  0x23   :  { %34 = dma.hbm_to_vmem [thread:$0]  %s984_s1, 1024, %s29_s27, [#allocation6], %s881_s0, %s881_s0, %s882_s9  }
  0x24   :  { %871 = dma.done.wait [#allocation3], 4096  }
  0x25   :  { %872 = vsyncadd [#allocation3], 4294963200 }
  0x26   :  { %873 = dma.done.wait [#allocation6], 1024  }
  0x27   :  { %874 = vsyncadd [#allocation6], 4294966272  ;;  %v797_v0 = vld [vmem:[#allocation5] sm:$0xff]   ;;  %v798_v1 = vld [vmem:[#allocation5 + $0x8] sm:$0xff]  }
  0x28   :  { %726 = vmatprep.subr.bf16.mxu0 %v797_v0  ;;  %774 = vmatprep.subr.bf16.mxu1 %v797_v0  ;;  %v799_v2 = vld [vmem:[#allocation5 + $0x10] sm:$0xff]   ;;  %v800_v3 = vld [vmem:[#allocation5 + $0x18] sm:$0xff]   ;;  %v44_v4 = vld [vmem:[#allocation2] sm:$0xff] }
  0x29   :  { %727 = vmatpush3.bf16.msra.mxu0 %v797_v0  ;;  %782 = vmatpush3.bf16.msra.mxu1 %v797_v0  ;;  %v45_v5 = vld [vmem:[#allocation2 + $0x8] sm:$0xff]  ;;  %v60_v6 = vld [vmem:[#allocation2 + $0x80] sm:$0xff]  ;;  %v803_v12 = vld [vmem:[#allocation5 + $0x30] sm:$0xff]  }
  0x2a   :  { %728 = vmatprep.subr.bf16.mxu0 %v798_v1  ;;  %775 = vmatprep.subr.bf16.mxu1 %v798_v1  ;;  %v76_v7 = vpack.c.bf16 %v45_v5, %v44_v4  ;;  %v61_v8 = vld [vmem:[#allocation2 + $0x88] sm:$0xff]  ;;  %v801_v10 = vld [vmem:[#allocation5 + $0x20] sm:$0xff]   ;;  %v804_v13 = vld [vmem:[#allocation5 + $0x38] sm:$0xff]  }
  0x2b   :  { %v84_v9 = vpack.c.bf16 %v61_v8, %v60_v6  ;;  %v802_v11 = vld [vmem:[#allocation5 + $0x28] sm:$0xff]   ;;  %v46_v14 = vld [vmem:[#allocation2 + $0x10] sm:$0xff]  ;;  %v47_v15 = vld [vmem:[#allocation2 + $0x18] sm:$0xff] }
  0x2c   :  { %742 = vmatprep.mubr.bf16.mxu0 %v76_v7  ;;  %v62_v16 = vld [vmem:[#allocation2 + $0x90] sm:$0xff]  ;;  %v63_v17 = vld [vmem:[#allocation2 + $0x98] sm:$0xff]  ;;  %v48_v18 = vld [vmem:[#allocation2 + $0x20] sm:$0xff]  ;;  %v77_v22 = vpack.c.bf16 %v47_v15, %v46_v14 }
  0x2d   :  { %729 = vmatpush3.bf16.msra.mxu0 %v798_v1  ;;  %783 = vmatpush3.bf16.msra.mxu1 %v798_v1  ;;  %v49_v19 = vld [vmem:[#allocation2 + $0x28] sm:$0xff]  ;;  %v64_v20 = vld [vmem:[#allocation2 + $0xa0] sm:$0xff]  ;;  %v85_v23 = vpack.c.bf16 %v63_v17, %v62_v16  ;;  %v50_v26 = vld [vmem:[#allocation2 + $0x30] sm:$0xff] }
  0x2e   :  { %730 = vmatprep.subr.bf16.mxu0 %v799_v2  ;;  %776 = vmatprep.subr.bf16.mxu1 %v799_v2  ;;  %v65_v21 = vld [vmem:[#allocation2 + $0xa8] sm:$0xff]  ;;  %v78_v24 = vpack.c.bf16 %v49_v19, %v48_v18  ;;  %v51_v27 = vld [vmem:[#allocation2 + $0x38] sm:$0xff]  ;;  %v66_v28 = vld [vmem:[#allocation2 + $0xb0] sm:$0xff] }
  0x2f   :  { %758 = vmatprep.mubr.bf16.mxu1 %v84_v9  ;;  %v86_v25 = vpack.c.bf16 %v65_v21, %v64_v20  ;;  %v67_v29 = vld [vmem:[#allocation2 + $0xb8] sm:$0xff]  ;;  %v52_v30 = vld [vmem:[#allocation2 + $0x40] sm:$0xff]  ;;  %v53_v31 = vld [vmem:[#allocation2 + $0x48] sm:$0xff]  ;;  %v79_v34 = vpack.c.bf16 %v51_v27, %v50_v26 }
  0x30   :  { %v68_v32 = vld [vmem:[#allocation2 + $0xc0] sm:$0xff]  ;;  %v69_v33 = vld [vmem:[#allocation2 + $0xc8] sm:$0xff]  ;;  %v87_v35 = vpack.c.bf16 %v67_v29, %v66_v28  ;;  %v80_v36 = vpack.c.bf16 %v53_v31, %v52_v30  ;;  %v54_v38 = vld [vmem:[#allocation2 + $0x50] sm:$0xff] }
  0x31   :  { %731 = vmatpush3.bf16.msra.mxu0 %v799_v2  ;;  %784 = vmatpush3.bf16.msra.mxu1 %v799_v2  ;;  %v88_v37 = vpack.c.bf16 %v69_v33, %v68_v32  ;;  %v55_v39 = vld [vmem:[#allocation2 + $0x58] sm:$0xff]  ;;  %v70_v40 = vld [vmem:[#allocation2 + $0xd0] sm:$0xff]  ;;  %v56_v42 = vld [vmem:[#allocation2 + $0x60] sm:$0xff] }
  0x32   :  { %732 = vmatprep.subr.bf16.mxu0 %v800_v3  ;;  %777 = vmatprep.subr.bf16.mxu1 %v800_v3  ;;  %v71_v41 = vld [vmem:[#allocation2 + $0xd8] sm:$0xff]  ;;  %v57_v43 = vld [vmem:[#allocation2 + $0x68] sm:$0xff]  ;;  %v72_v44 = vld [vmem:[#allocation2 + $0xe0] sm:$0xff]  ;;  %v81_v46 = vpack.c.bf16 %v55_v39, %v54_v38 }
  0x33   :  { %v73_v45 = vld [vmem:[#allocation2 + $0xe8] sm:$0xff]  ;;  %v89_v47 = vpack.c.bf16 %v71_v41, %v70_v40  ;;  %v82_v48 = vpack.c.bf16 %v57_v43, %v56_v42  ;;  %v58_v50 = vld [vmem:[#allocation2 + $0x70] sm:$0xff]  ;;  %v59_v51 = vld [vmem:[#allocation2 + $0x78] sm:$0xff] }
  0x34   :  { %v90_v49 = vpack.c.bf16 %v73_v45, %v72_v44  ;;  %v74_v52 = vld [vmem:[#allocation2 + $0xf0] sm:$0xff]  ;;  %v75_v53 = vld [vmem:[#allocation2 + $0xf8] sm:$0xff]  ;;  %v83_v54 = vpack.c.bf16 %v59_v51, %v58_v50  ;;  %v934_v56 = vld [vmem:[%s985_s2] ss:$0 sm:$0xff]  ;;  %s883_s2 = smov [#allocation7]  }
  0x35   :  { %733 = vmatpush3.bf16.msra.mxu0 %v800_v3  ;;  %785 = vmatpush3.bf16.msra.mxu1 %v800_v3  ;;  %v91_v55 = vpack.c.bf16 %v75_v53, %v74_v52  ;;  %s521_s13 = sshll.u32 %s883_s2, 4  ;;  %s522_s13 = int_to_ptr.vmem [resolvable:$true] %s521_s13 }
  0x36   :  { %734 = vmatprep.subr.bf16.mxu0 %v801_v10  ;;  %778 = vmatprep.subr.bf16.mxu1 %v801_v10  ;;  %s849_s14 = scalar_lea.vmem %s522_s13, 2048  ;;  %p854_p3 = scmp.lt.s32.totalorder %s522_s13, %s522_s13 }
  0x37   :  { %p850_p2 = scmp.ne.s32.totalorder %s522_s13, %s849_s14  ;;  %p855_p4 = scmp.lt.s32.totalorder %s849_s14, %s849_s14 }
  0x39   :  { %735 = vmatpush3.bf16.msra.mxu0 %v801_v10  ;;  %786 = vmatpush3.bf16.msra.mxu1 %v801_v10  ;;  %p856_p5 = por %p855_p4, %p854_p3 }
  0x3a   :  { %736 = vmatprep.subr.bf16.mxu0 %v802_v11  ;;  %779 = vmatprep.subr.bf16.mxu1 %v802_v11 }
  0x3b   :  { %p857_p6 = pnand %p856_p5, %p850_p2 }
  0x3d   :  { %737 = vmatpush3.bf16.msra.mxu0 %v802_v11  ;;  %787 = vmatpush3.bf16.msra.mxu1 %v802_v11 }
  0x3e   :  { %738 = vmatprep.subr.bf16.mxu0 %v803_v12  ;;  %780 = vmatprep.subr.bf16.mxu1 %v803_v12 }
  0x41   :  { %739 = vmatpush3.bf16.msra.mxu0 %v803_v12  ;;  %788 = vmatpush3.bf16.msra.mxu1 %v803_v12 }
  0x42   :  { %740 = vmatprep.subr.bf16.mxu0 %v804_v13  ;;  %781 = vmatprep.subr.bf16.mxu1 %v804_v13 }
  0x45   :  { %741 = vmatpush3.bf16.msra.mxu0 %v804_v13  ;;  %789 = vmatpush3.bf16.msra.mxu1 %v804_v13 }
  0x48   :  { %743 = vmatmul.mubr.bf16.vlgmr.msra.gmra.mrb[0].mxu0 %v77_v22  ;;  %759 = vmatmul.mubr.bf16.vlgmr.msra.gmra.mrb[0].mxu1 %v85_v23 }
  0x49   :  { %746 = vmatprep.mubr.bf16.mxu0 %v78_v24  ;;  %762 = vmatprep.mubr.bf16.mxu1 %v86_v25 }
  0x50   :  { %747 = vmatmul.mubr.bf16.gmra.mrb[4].mxu0 %v79_v34  ;;  %763 = vmatmul.mubr.bf16.gmra.mrb[4].mxu1 %v87_v35 }
  0x51   :  { %750 = vmatprep.mubr.bf16.mxu0 %v80_v36  ;;  %766 = vmatprep.mubr.bf16.mxu1 %v88_v37 }
  0x58   :  { %751 = vmatmul.mubr.bf16.gmra.mrb[8].mxu0 %v81_v46  ;;  %767 = vmatmul.mubr.bf16.gmra.mrb[8].mxu1 %v89_v47 }
  0x59   :  { %754 = vmatprep.mubr.bf16.mxu0 %v82_v48  ;;  %770 = vmatprep.mubr.bf16.mxu1 %v90_v49 }
  0x60   :  { %755 = vmatmul.mubr.bf16.gmra.mrb[12].mxu0 %v83_v54  ;;  %771 = vmatmul.mubr.bf16.gmra.mrb[12].mxu1 %v91_v55 }
 0x11b   :  { %v744_v57 = vpop.f32.mrb[0].mxu0  ;;  %v760_v58 = vpop.f32.mrb[0].mxu1 }
 0x11c   :  { %v206_v59 = vadd.f32 %v744_v57, %v934_v56  ;;  %v270_v60 = vadd.f32 %v760_v58, %v934_v56  ;;  %v197_v61 = vpop.f32.mrb[1].mxu0  ;;  %v261_v62 = vpop.f32.mrb[1].mxu1 }
 0x11d   :  { %v198_v63 = vadd.f32 %v934_v56, %v197_v61  ;;  %v262_v0 = vadd.f32 %v934_v56, %v261_v62  ;;  %v745_v1 = vpop.f32.mrb[2].mxu0  ;;  %v761_v2 = vpop.f32.mrb[2].mxu1 }
 0x11e   :  { %v209_v3 = vadd.f32 %v745_v1, %v934_v56  ;;  %v273_v4 = vadd.f32 %v761_v2, %v934_v56  ;;  %v200_v5 = vpop.f32.mrb[3].mxu0  ;;  %v264_v6 = vpop.f32.mrb[3].mxu1  ;;  %v326_v9 = vmax.f32 %v206_v59, 0.0  ;;  %v342_v10 = vmax.f32 %v270_v60, 0.0 }
 0x11f   :  { %v201_v7 = vadd.f32 %v934_v56, %v200_v5  ;;  %v265_v8 = vadd.f32 %v934_v56, %v264_v6  ;;  %v324_v13 = vmax.f32 %v198_v63, 0.0  ;;  %v340_v14 = vmax.f32 %v262_v0, 0.0 }
 0x120   :  { %v327_v11 = vmax.f32 %v209_v3, 0.0  ;;  %v343_v12 = vmax.f32 %v273_v4, 0.0 }
 0x121   :  { %v325_v15 = vmax.f32 %v201_v7, 0.0  ;;  %v341_v16 = vmax.f32 %v265_v8, 0.0 }
 0x122   :  { %v615_v17 = vpack.c.bf16 %v327_v11, %v326_v9  ;;  %v655_v18 = vpack.c.bf16 %v343_v12, %v342_v10 }
 0x123   :  { %v610_v19 = vpack.c.bf16 %v325_v15, %v324_v13  ;;  %v650_v20 = vpack.c.bf16 %v341_v16, %v340_v14  ;;  %v748_v21 = vpop.f32.mrb[4].mxu0  ;;  %v764_v22 = vpop.f32.mrb[4].mxu1 }
 0x124   :  { %687 = vst [vmem:[#allocation7 + $0x8] sm:$0xff] %v615_v17   ;;  %695 = vst [vmem:[#allocation7 + $0x48] sm:$0xff] %v655_v18   ;;  %v222_v23 = vadd.f32 %v748_v21, %v934_v56  ;;  %v286_v24 = vadd.f32 %v764_v22, %v934_v56  ;;  %v213_v25 = vpop.f32.mrb[5].mxu0  ;;  %v277_v26 = vpop.f32.mrb[5].mxu1 }
 0x125   :  { %611 = vst [vmem:[#allocation7] sm:$0xff] %v610_v19   ;;  %694 = vst [vmem:[#allocation7 + $0x40] sm:$0xff] %v650_v20   ;;  %v214_v27 = vadd.f32 %v934_v56, %v213_v25  ;;  %v278_v28 = vadd.f32 %v934_v56, %v277_v26  ;;  %v749_v29 = vpop.f32.mrb[6].mxu0  ;;  %v765_v30 = vpop.f32.mrb[6].mxu1 }
 0x126   :  { %v225_v31 = vadd.f32 %v749_v29, %v934_v56  ;;  %v289_v32 = vadd.f32 %v765_v30, %v934_v56  ;;  %v216_v33 = vpop.f32.mrb[7].mxu0  ;;  %v280_v34 = vpop.f32.mrb[7].mxu1  ;;  %v330_v37 = vmax.f32 %v222_v23, 0.0  ;;  %v346_v38 = vmax.f32 %v286_v24, 0.0 }
 0x127   :  { %v217_v35 = vadd.f32 %v934_v56, %v216_v33  ;;  %v281_v36 = vadd.f32 %v934_v56, %v280_v34  ;;  %v328_v41 = vmax.f32 %v214_v27, 0.0  ;;  %v344_v42 = vmax.f32 %v278_v28, 0.0 }
 0x128   :  { %v331_v39 = vmax.f32 %v225_v31, 0.0  ;;  %v347_v40 = vmax.f32 %v289_v32, 0.0 }
 0x129   :  { %v329_v43 = vmax.f32 %v217_v35, 0.0  ;;  %v345_v44 = vmax.f32 %v281_v36, 0.0 }
 0x12a   :  { %v625_v45 = vpack.c.bf16 %v331_v39, %v330_v37  ;;  %v665_v46 = vpack.c.bf16 %v347_v40, %v346_v38 }
 0x12b   :  { %v620_v47 = vpack.c.bf16 %v329_v43, %v328_v41  ;;  %v660_v48 = vpack.c.bf16 %v345_v44, %v344_v42  ;;  %v752_v49 = vpop.f32.mrb[8].mxu0  ;;  %v768_v50 = vpop.f32.mrb[8].mxu1 }
 0x12c   :  { %689 = vst [vmem:[#allocation7 + $0x18] sm:$0xff] %v625_v45   ;;  %697 = vst [vmem:[#allocation7 + $0x58] sm:$0xff] %v665_v46   ;;  %v238_v51 = vadd.f32 %v752_v49, %v934_v56  ;;  %v302_v52 = vadd.f32 %v768_v50, %v934_v56  ;;  %v229_v53 = vpop.f32.mrb[9].mxu0  ;;  %v293_v54 = vpop.f32.mrb[9].mxu1 }
 0x12d   :  { %688 = vst [vmem:[#allocation7 + $0x10] sm:$0xff] %v620_v47   ;;  %696 = vst [vmem:[#allocation7 + $0x50] sm:$0xff] %v660_v48   ;;  %v230_v55 = vadd.f32 %v934_v56, %v229_v53  ;;  %v294_v57 = vadd.f32 %v934_v56, %v293_v54  ;;  %v753_v58 = vpop.f32.mrb[10].mxu0  ;;  %v769_v59 = vpop.f32.mrb[10].mxu1 }
 0x12e   :  { %v241_v60 = vadd.f32 %v753_v58, %v934_v56  ;;  %v305_v61 = vadd.f32 %v769_v59, %v934_v56  ;;  %v232_v62 = vpop.f32.mrb[11].mxu0  ;;  %v296_v63 = vpop.f32.mrb[11].mxu1  ;;  %v334_v2 = vmax.f32 %v238_v51, 0.0  ;;  %v350_v3 = vmax.f32 %v302_v52, 0.0 }
 0x12f   :  { %v233_v0 = vadd.f32 %v934_v56, %v232_v62  ;;  %v297_v1 = vadd.f32 %v934_v56, %v296_v63  ;;  %v332_v6 = vmax.f32 %v230_v55, 0.0  ;;  %v348_v7 = vmax.f32 %v294_v57, 0.0 }
 0x130   :  { %v335_v4 = vmax.f32 %v241_v60, 0.0  ;;  %v351_v5 = vmax.f32 %v305_v61, 0.0 }
 0x131   :  { %v333_v8 = vmax.f32 %v233_v0, 0.0  ;;  %v349_v9 = vmax.f32 %v297_v1, 0.0 }
 0x132   :  { %v635_v10 = vpack.c.bf16 %v335_v4, %v334_v2  ;;  %v675_v11 = vpack.c.bf16 %v351_v5, %v350_v3 }
 0x133   :  { %v630_v12 = vpack.c.bf16 %v333_v8, %v332_v6  ;;  %v670_v13 = vpack.c.bf16 %v349_v9, %v348_v7  ;;  %v756_v14 = vpop.f32.mrb[12].mxu0  ;;  %v772_v15 = vpop.f32.mrb[12].mxu1 }
 0x134   :  { %691 = vst [vmem:[#allocation7 + $0x28] sm:$0xff] %v635_v10   ;;  %699 = vst [vmem:[#allocation7 + $0x68] sm:$0xff] %v675_v11   ;;  %v254_v16 = vadd.f32 %v756_v14, %v934_v56  ;;  %v318_v17 = vadd.f32 %v772_v15, %v934_v56  ;;  %v245_v18 = vpop.f32.mrb[13].mxu0  ;;  %v309_v19 = vpop.f32.mrb[13].mxu1 }
 0x135   :  { %690 = vst [vmem:[#allocation7 + $0x20] sm:$0xff] %v630_v12   ;;  %698 = vst [vmem:[#allocation7 + $0x60] sm:$0xff] %v670_v13   ;;  %v246_v20 = vadd.f32 %v934_v56, %v245_v18  ;;  %v310_v21 = vadd.f32 %v934_v56, %v309_v19  ;;  %v757_v22 = vpop.f32.mrb[14].mxu0  ;;  %v773_v23 = vpop.f32.mrb[14].mxu1 }
 0x136   :  { %v257_v24 = vadd.f32 %v757_v22, %v934_v56  ;;  %v321_v25 = vadd.f32 %v773_v23, %v934_v56  ;;  %v248_v26 = vpop.f32.mrb[15].mxu0  ;;  %v312_v27 = vpop.f32.mrb[15].mxu1  ;;  %v338_v30 = vmax.f32 %v254_v16, 0.0  ;;  %v354_v31 = vmax.f32 %v318_v17, 0.0 }
 0x137   :  { %v249_v28 = vadd.f32 %v934_v56, %v248_v26  ;;  %v313_v29 = vadd.f32 %v934_v56, %v312_v27  ;;  %v336_v34 = vmax.f32 %v246_v20, 0.0  ;;  %v352_v35 = vmax.f32 %v310_v21, 0.0 }
 0x138   :  { %v339_v32 = vmax.f32 %v257_v24, 0.0  ;;  %v355_v33 = vmax.f32 %v321_v25, 0.0 }
 0x139   :  { %v337_v36 = vmax.f32 %v249_v28, 0.0  ;;  %v353_v37 = vmax.f32 %v313_v29, 0.0 }
 0x13a   :  { %v645_v38 = vpack.c.bf16 %v339_v32, %v338_v30  ;;  %v685_v39 = vpack.c.bf16 %v355_v33, %v354_v31 }
 0x13b   :  { %v640_v40 = vpack.c.bf16 %v337_v36, %v336_v34  ;;  %v680_v41 = vpack.c.bf16 %v353_v37, %v352_v35 }
 0x13c   :  { %693 = vst [vmem:[#allocation7 + $0x38] sm:$0xff] %v645_v38   ;;  %701 = vst [vmem:[#allocation7 + $0x78] sm:$0xff] %v685_v39  }
 0x13d   :  { %692 = vst [vmem:[#allocation7 + $0x30] sm:$0xff] %v640_v40   ;;  %700 = vst [vmem:[#allocation7 + $0x70] sm:$0xff] %v680_v41  }
 0x13e   :  { %860 = shalt.err (!%p857_p6)
}
 0x13f   :  { %s861_s17 = scalar_lea.hbm %s986_s3, 2048 }
 0x140   :  { %p862_p7 = scmp.ne.s32.totalorder %s986_s3, %s861_s17  ;;  %p865_p8 = scmp.lt.u32.totalorder %s861_s17, %s986_s3 }
 0x142   :  { %p867_p9 = pnand %p865_p8, %p862_p7 }
 0x144   :  { %870 = shalt.err (!%p867_p9)
}
 0x145   :  { %527 = dma.vmem_to_hbm [thread:$0]  %s522_s13, 2048, %s986_s3, [#allocation4], %s881_s0, %s881_s0, %s882_s9  }
 0x146   :  { %875 = dma.done.wait [#allocation4], 2048  }
 0x147   :  { %876 = vsyncadd [#allocation4], 4294965248 }
 0x148   :  { %531 = vsyncpa [#allocation3], 1 }
 0x149   :  { %532 = vsyncpa [#allocation6], 1 }
 0x14a   :  { %533 = vsyncpa [#allocation4], 1 }

</bundles_post_ra>
